<compile_context>
chip_gen: v7x
topology: tpu7x:2x2x1
jax: 0.10.0
libtpu: 0.0.40
codegen_flags: <defaults>
</compile_context>

<pallas_src>
import jax
import jax.numpy as jnp
from jax.experimental import pallas as pl
from jax.experimental.pallas import tpu as pltpu

INPUT_DIM = 6
HIDDEN_DIM1 = 64
Z_DIM = 30

HALF = 64        # lane offset of the sd head inside the fused/padded head slab
HEAD_PAD = 128   # fused (mu|sd) head output, padded to a full lane width
OUT_PAD = 128    # decoder logits/softmax output, padded to a full lane width


def _round_up(n, m):
    return ((n + m - 1) // m) * m


def _vae_kernel(x_ref, eps_ref,
                w1_ref, b1_ref,          # encoder linear1   [6,64], [1,64]
                wh_ref, bh_ref,          # fused mu/sd heads [64,128], [1,128]
                wd1_ref, bd1_ref,        # decoder linear1   [64,64] (rows 30:64 zero), [1,64]
                wo_ref, bo_ref,          # decoder out1      [64,128] (cols 6:128 zero), [1,128]
                heads_ref, pred_ref):
    x = x_ref[...]                                               # [TB, 6]

    # ---- Encoder ----
    h1 = jnp.tanh(
        jnp.dot(x, w1_ref[...], preferred_element_type=jnp.float32) + b1_ref[...]
    )                                                            # [TB, 64]
    # Fused heads: lanes [0:30]=z_mu, [30:64]=0, [64:94]=z_sd, [94:128]=0
    z_heads = jnp.dot(h1, wh_ref[...], preferred_element_type=jnp.float32) + bh_ref[...]
    heads_ref[...] = z_heads.astype(heads_ref.dtype)             # lane-dense store

    # ---- Reparameterize: x_sample = z_mu + eps * exp(z_sd / 2) ----
    z_mu_h = z_heads[:, :HALF]                                   # [TB, 64] (30 real + zeros)
    z_sd_h = z_heads[:, HALF:]                                   # [TB, 64] (30 real + zeros)
    # eps is zero-padded beyond lane Z_DIM, so padded lanes stay exactly 0.
    x_sample = z_mu_h + eps_ref[...] * jnp.exp(0.5 * z_sd_h)     # [TB, 64]

    # ---- Decoder ----
    h2 = jnp.tanh(
        jnp.dot(x_sample, wd1_ref[...], preferred_element_type=jnp.float32) + bd1_ref[...]
    )                                                            # [TB, 64]
    logits = jnp.dot(h2, wo_ref[...], preferred_element_type=jnp.float32) + bo_ref[...]
    # Masked softmax over the INPUT_DIM real lanes (padded lanes -> exactly 0).
    lane = jax.lax.broadcasted_iota(jnp.int32, logits.shape, 1)
    logits = jnp.where(lane < INPUT_DIM, logits, -jnp.inf)
    m = jnp.max(logits, axis=-1, keepdims=True)
    p = jnp.exp(logits - m)
    pred_ref[...] = (p / jnp.sum(p, axis=-1, keepdims=True)).astype(pred_ref.dtype)


def _prepare_fused_params(params):
    """Fuse mu/sd heads and lane-pad narrow weights (done once, outside the kernel)."""
    w1, b1, wmu, bmu, wsd, bsd, wd1, bd1, wout, bout = params
    f32 = jnp.float32

    wh = jnp.zeros((HIDDEN_DIM1, HEAD_PAD), f32)
    wh = wh.at[:, :Z_DIM].set(wmu).at[:, HALF:HALF + Z_DIM].set(wsd)
    bh = jnp.zeros((1, HEAD_PAD), f32)
    bh = bh.at[:, :Z_DIM].set(bmu).at[:, HALF:HALF + Z_DIM].set(bsd)

    wd1p = jnp.zeros((HALF, HIDDEN_DIM1), f32).at[:Z_DIM, :].set(wd1)

    wop = jnp.zeros((HIDDEN_DIM1, OUT_PAD), f32).at[:, :INPUT_DIM].set(wout)
    bop = jnp.zeros((1, OUT_PAD), f32).at[:, :INPUT_DIM].set(bout)

    return (w1, b1, wh, bh, wd1p, bd1, wop, bop)


def vae_forward(x, params, eps=None):
    """x: [B, INPUT_DIM] f32; eps: optional [B, Z_DIM] f32 (None => inference, eps=0).

    Returns (generated_x [B, INPUT_DIM], z_mu [B, Z_DIM], z_sd [B, Z_DIM])."""
    B = x.shape[0]
    if eps is None:
        eps = jnp.zeros((B, Z_DIM), jnp.float32)

    fused = _prepare_fused_params(params)

    # Batch tiling: large tiles for pipelining, padded to a multiple of 8 rows.
    TB = min(512, _round_up(B, 8))
    B_pad = _round_up(B, TB)
    x_p = jnp.zeros((B_pad, INPUT_DIM), jnp.float32).at[:B].set(x)
    eps_p = jnp.zeros((B_pad, HALF), jnp.float32).at[:B, :Z_DIM].set(eps)

    grid = (B_pad // TB,)

    def tile(shape):
        return pl.BlockSpec(shape, lambda i: (i, 0))

    def resident(a):
        return pl.BlockSpec(a.shape, lambda i: (0, 0))   # weights stay in VMEM

    param_bytes = 4 * sum(int(p.size) for p in fused)
    cost = pl.CostEstimate(
        flops=2 * B_pad * (INPUT_DIM * HIDDEN_DIM1 + HIDDEN_DIM1 * HEAD_PAD
                           + HALF * HIDDEN_DIM1 + HIDDEN_DIM1 * OUT_PAD),
        transcendentals=B_pad * (HIDDEN_DIM1 + HALF + HIDDEN_DIM1 + OUT_PAD),
        bytes_accessed=4 * B_pad * (INPUT_DIM + HALF + HEAD_PAD + OUT_PAD) + param_bytes,
    )

    heads_pad, pred_pad = pl.pallas_call(
        _vae_kernel,
        grid=grid,
        in_specs=[tile((TB, INPUT_DIM)), tile((TB, HALF))] + [resident(a) for a in fused],
        out_specs=(tile((TB, HEAD_PAD)), tile((TB, OUT_PAD))),
        out_shape=(jax.ShapeDtypeStruct((B_pad, HEAD_PAD), jnp.float32),
                   jax.ShapeDtypeStruct((B_pad, OUT_PAD), jnp.float32)),
        compiler_params=pltpu.CompilerParams(dimension_semantics=("parallel",)),
        cost_estimate=cost,
    )(x_p, eps_p, *fused)

    z_mu = heads_pad[:B, :Z_DIM]
    z_sd = heads_pad[:B, HALF:HALF + Z_DIM]
    generated_x = pred_pad[:B, :INPUT_DIM]
    return generated_x, z_mu, z_sd


def init_params(key):
    """Deterministic init mirroring nn.Linear (weights stored as [in, out])."""
    ks = jax.random.split(key, 10)

    def uniform(k, shape, fan_in):
        bound = 1.0 / jnp.sqrt(fan_in)
        return jax.random.uniform(k, shape, jnp.float32, -bound, bound)

    w1 = uniform(ks[0], (INPUT_DIM, HIDDEN_DIM1), INPUT_DIM)
    b1 = uniform(ks[1], (1, HIDDEN_DIM1), INPUT_DIM)
    wmu = uniform(ks[2], (HIDDEN_DIM1, Z_DIM), HIDDEN_DIM1)
    bmu = uniform(ks[3], (1, Z_DIM), HIDDEN_DIM1)
    wsd = uniform(ks[4], (HIDDEN_DIM1, Z_DIM), HIDDEN_DIM1)
    bsd = uniform(ks[5], (1, Z_DIM), HIDDEN_DIM1)
    wd1 = uniform(ks[6], (Z_DIM, HIDDEN_DIM1), Z_DIM)
    bd1 = uniform(ks[7], (1, HIDDEN_DIM1), Z_DIM)
    wout = uniform(ks[8], (HIDDEN_DIM1, INPUT_DIM), HIDDEN_DIM1)
    bout = uniform(ks[9], (1, INPUT_DIM), HIDDEN_DIM1)
    return (w1, b1, wmu, bmu, wsd, bsd, wd1, bd1, wout, bout)


if __name__ == "__main__":
    key = jax.random.PRNGKey(0)
    kx, kp, ke = jax.random.split(key, 3)

    B = 8
    x = jax.random.normal(kx, (B, INPUT_DIM), jnp.float32)
    params = init_params(kp)
    eps = jax.random.normal(ke, (B, Z_DIM), jnp.float32)   # training-mode reparameterization

    gen, z_mu, z_sd = vae_forward(x, params, eps)
    jax.block_until_ready((gen, z_mu, z_sd))

    # Inference path (eps = 0) as well.
    gen_eval, z_mu_eval, _ = vae_forward(x, params, None)
    jax.block_until_ready((gen_eval, z_mu_eval))

    # --- Pure-JAX reference ---
    w1, b1, wmu, bmu, wsd, bsd, wd1, bd1, wout, bout = params
    h1 = jnp.tanh(x @ w1 + b1)
    mu_ref = h1 @ wmu + bmu
    sd_ref = h1 @ wsd + bsd
    xs = mu_ref + eps * jnp.exp(sd_ref / 2.0)
    h2 = jnp.tanh(xs @ wd1 + bd1)
    pred_ref = jax.nn.softmax(h2 @ wout + bout, axis=1)

    h2e = jnp.tanh(mu_ref @ wd1 + bd1)
    pred_eval_ref = jax.nn.softmax(h2e @ wout + bout, axis=1)

    assert jnp.allclose(z_mu, mu_ref, atol=1e-4, rtol=1e-4), "mu mismatch"
    assert jnp.allclose(z_sd, sd_ref, atol=1e-4, rtol=1e-4), "sd mismatch"
    assert jnp.allclose(gen, pred_ref, atol=1e-4, rtol=1e-4), "decoder (train) mismatch"
    assert jnp.allclose(gen_eval, pred_eval_ref, atol=1e-4, rtol=1e-4), "decoder (eval) mismatch"

    print("KERNEL_OK")
</pallas_src>

<mosaic_0001>
module attributes {stable_mosaic.version = 11 : i64} {
  func.func @_vae_kernel(%arg0: i32, %arg1: memref<8x6xf32, #tpu.memory_space<vmem>>, %arg2: memref<8x64xf32, #tpu.memory_space<vmem>>, %arg3: memref<6x64xf32, #tpu.memory_space<vmem>>, %arg4: memref<1x64xf32, #tpu.memory_space<vmem>>, %arg5: memref<64x128xf32, #tpu.memory_space<vmem>>, %arg6: memref<1x128xf32, #tpu.memory_space<vmem>>, %arg7: memref<64x64xf32, #tpu.memory_space<vmem>>, %arg8: memref<1x64xf32, #tpu.memory_space<vmem>>, %arg9: memref<64x128xf32, #tpu.memory_space<vmem>>, %arg10: memref<1x128xf32, #tpu.memory_space<vmem>>, %arg11: memref<8x128xf32, #tpu.memory_space<vmem>>, %arg12: memref<8x128xf32, #tpu.memory_space<vmem>>) attributes {dimension_semantics = [#tpu.dimension_semantics<parallel>], iteration_bounds = array<i64: 1>, scalar_prefetch = 0 : i64, scratch_operands = 0 : i64, tpu.core_type = #tpu.core_type<tc>, window_params = [{transform_indices = @transform_0, window_bounds = array<i64: 8, 6>}, {transform_indices = @transform_1, window_bounds = array<i64: 8, 64>}, {pipeline_mode = #tpu.pipeline_mode<synchronous>, transform_indices = @transform_2, window_bounds = array<i64: 6, 64>}, {pipeline_mode = #tpu.pipeline_mode<synchronous>, transform_indices = @transform_3, window_bounds = array<i64: 1, 64>}, {pipeline_mode = #tpu.pipeline_mode<synchronous>, transform_indices = @transform_4, window_bounds = array<i64: 64, 128>}, {pipeline_mode = #tpu.pipeline_mode<synchronous>, transform_indices = @transform_5, window_bounds = array<i64: 1, 128>}, {pipeline_mode = #tpu.pipeline_mode<synchronous>, transform_indices = @transform_6, window_bounds = array<i64: 64, 64>}, {pipeline_mode = #tpu.pipeline_mode<synchronous>, transform_indices = @transform_7, window_bounds = array<i64: 1, 64>}, {pipeline_mode = #tpu.pipeline_mode<synchronous>, transform_indices = @transform_8, window_bounds = array<i64: 64, 128>}, {pipeline_mode = #tpu.pipeline_mode<synchronous>, transform_indices = @transform_9, window_bounds = array<i64: 1, 128>}, {transform_indices = @transform_10, window_bounds = array<i64: 8, 128>}, {transform_indices = @transform_11, window_bounds = array<i64: 8, 128>}]} {
    %c0 = arith.constant 0 : index
    %c0_0 = arith.constant 0 : index
    %0 = vector.load %arg1[%c0, %c0_0] : memref<8x6xf32, #tpu.memory_space<vmem>>, vector<8x6xf32>
    %c0_1 = arith.constant 0 : index
    %c0_2 = arith.constant 0 : index
    %1 = vector.load %arg3[%c0_1, %c0_2] : memref<6x64xf32, #tpu.memory_space<vmem>>, vector<6x64xf32>
    %cst = arith.constant dense<0.000000e+00> : vector<8x64xf32>
    %2 = tpu.matmul %0, %1, %cst {dimension_numbers = #tpu.dot_dimension_numbers<[1], [0], [0], [1], [0, 0, 1, 1], [], []>} : vector<8x6xf32>, vector<6x64xf32>, vector<8x64xf32> -> vector<8x64xf32>
    %c0_3 = arith.constant 0 : index
    %c0_4 = arith.constant 0 : index
    %3 = vector.load %arg4[%c0_3, %c0_4] : memref<1x64xf32, #tpu.memory_space<vmem>>, vector<1x64xf32>
    %4 = vector.broadcast %3 : vector<1x64xf32> to vector<8x64xf32>
    %5 = arith.addf %2, %4 : vector<8x64xf32>
    %6 = math.tanh %5 : vector<8x64xf32>
    %c0_5 = arith.constant 0 : index
    %c0_6 = arith.constant 0 : index
    %7 = vector.load %arg5[%c0_5, %c0_6] : memref<64x128xf32, #tpu.memory_space<vmem>>, vector<64x128xf32>
    %cst_7 = arith.constant dense<0.000000e+00> : vector<8x128xf32>
    %8 = tpu.matmul %6, %7, %cst_7 {dimension_numbers = #tpu.dot_dimension_numbers<[1], [0], [0], [1], [0, 0, 1, 1], [], []>} : vector<8x64xf32>, vector<64x128xf32>, vector<8x128xf32> -> vector<8x128xf32>
    %c0_8 = arith.constant 0 : index
    %c0_9 = arith.constant 0 : index
    %9 = vector.load %arg6[%c0_8, %c0_9] : memref<1x128xf32, #tpu.memory_space<vmem>>, vector<1x128xf32>
    %10 = vector.broadcast %9 : vector<1x128xf32> to vector<8x128xf32>
    %11 = arith.addf %8, %10 : vector<8x128xf32>
    %c0_10 = arith.constant 0 : index
    %c0_11 = arith.constant 0 : index
    %12 = vector.load %arg11[%c0_10, %c0_11] : memref<8x128xf32, #tpu.memory_space<vmem>>, vector<8x128xf32>
    tpu.vector_store %arg11[%c0_10, %c0_11], %11 {strides = array<i32>} : memref<8x128xf32, #tpu.memory_space<vmem>>, vector<8x128xf32>,
    %13 = vector.extract_strided_slice %11 {offsets = [0, 0], sizes = [8, 64], strides = [1, 1]} : vector<8x128xf32> to vector<8x64xf32>
    %14 = vector.extract_strided_slice %11 {offsets = [0, 64], sizes = [8, 64], strides = [1, 1]} : vector<8x128xf32> to vector<8x64xf32>
    %c0_12 = arith.constant 0 : index
    %c0_13 = arith.constant 0 : index
    %15 = vector.load %arg2[%c0_12, %c0_13] : memref<8x64xf32, #tpu.memory_space<vmem>>, vector<8x64xf32>
    %cst_14 = arith.constant 5.000000e-01 : f32
    %16 = vector.broadcast %cst_14 : f32 to vector<8x64xf32>
    %17 = arith.mulf %16, %14 : vector<8x64xf32>
    %18 = math.exp %17 : vector<8x64xf32>
    %19 = arith.mulf %15, %18 : vector<8x64xf32>
    %20 = arith.addf %13, %19 : vector<8x64xf32>
    %c0_15 = arith.constant 0 : index
    %c0_16 = arith.constant 0 : index
    %21 = vector.load %arg7[%c0_15, %c0_16] : memref<64x64xf32, #tpu.memory_space<vmem>>, vector<64x64xf32>
    %cst_17 = arith.constant dense<0.000000e+00> : vector<8x64xf32>
    %22 = tpu.matmul %20, %21, %cst_17 {dimension_numbers = #tpu.dot_dimension_numbers<[1], [0], [0], [1], [0, 0, 1, 1], [], []>} : vector<8x64xf32>, vector<64x64xf32>, vector<8x64xf32> -> vector<8x64xf32>
    %c0_18 = arith.constant 0 : index
    %c0_19 = arith.constant 0 : index
    %23 = vector.load %arg8[%c0_18, %c0_19] : memref<1x64xf32, #tpu.memory_space<vmem>>, vector<1x64xf32>
    %24 = vector.broadcast %23 : vector<1x64xf32> to vector<8x64xf32>
    %25 = arith.addf %22, %24 : vector<8x64xf32>
    %26 = math.tanh %25 : vector<8x64xf32>
    %c0_20 = arith.constant 0 : index
    %c0_21 = arith.constant 0 : index
    %27 = vector.load %arg9[%c0_20, %c0_21] : memref<64x128xf32, #tpu.memory_space<vmem>>, vector<64x128xf32>
    %cst_22 = arith.constant dense<0.000000e+00> : vector<8x128xf32>
    %28 = tpu.matmul %26, %27, %cst_22 {dimension_numbers = #tpu.dot_dimension_numbers<[1], [0], [0], [1], [0, 0, 1, 1], [], []>} : vector<8x64xf32>, vector<64x128xf32>, vector<8x128xf32> -> vector<8x128xf32>
    %c0_23 = arith.constant 0 : index
    %c0_24 = arith.constant 0 : index
    %29 = vector.load %arg10[%c0_23, %c0_24] : memref<1x128xf32, #tpu.memory_space<vmem>>, vector<1x128xf32>
    %30 = vector.broadcast %29 : vector<1x128xf32> to vector<8x128xf32>
    %31 = arith.addf %28, %30 : vector<8x128xf32>
    %32 = tpu.iota {dimensions = array<i32: 1>} : vector<8x128xi32>
    %c6_i32 = arith.constant 6 : i32
    %33 = vector.broadcast %c6_i32 : i32 to vector<8x128xi32>
    %34 = arith.cmpi slt, %32, %33 : vector<8x128xi32>
    %cst_25 = arith.constant 0xFF800000 : f32
    %35 = vector.broadcast %cst_25 : f32 to vector<8x128xf32>
    %36 = arith.select %34, %31, %35 : vector<8x128xi1>, vector<8x128xf32>
    %cst_26 = arith.constant dense<0xFF800000> : vector<8xf32>
    %37 = vector.multi_reduction <maximumf>, %36, %cst_26 [1] : vector<8x128xf32> to vector<8xf32>
    %38 = vector.shape_cast %37 : vector<8xf32> to vector<8x1xf32>
    %39 = vector.broadcast %38 : vector<8x1xf32> to vector<8x128xf32>
    %40 = arith.subf %36, %39 : vector<8x128xf32>
    %41 = math.exp %40 : vector<8x128xf32>
    %cst_27 = arith.constant dense<0.000000e+00> : vector<8xf32>
    %42 = vector.multi_reduction <add>, %41, %cst_27 [1] : vector<8x128xf32> to vector<8xf32>
    %43 = vector.shape_cast %42 : vector<8xf32> to vector<8x1xf32>
    %44 = vector.broadcast %43 : vector<8x1xf32> to vector<8x128xf32>
    %45 = arith.divf %41, %44 : vector<8x128xf32>
    %c0_28 = arith.constant 0 : index
    %c0_29 = arith.constant 0 : index
    %46 = vector.load %arg12[%c0_28, %c0_29] : memref<8x128xf32, #tpu.memory_space<vmem>>, vector<8x128xf32>
    tpu.vector_store %arg12[%c0_28, %c0_29], %45 {strides = array<i32>} : memref<8x128xf32, #tpu.memory_space<vmem>>, vector<8x128xf32>,
    return
  }
  func.func @transform_0(%arg0: i32) -> (i32, i32) {
    %c0_i32 = arith.constant 0 : i32
    %c0_i32_0 = arith.constant 0 : i32
    return %arg0, %c0_i32 : i32, i32
  }
  func.func @transform_1(%arg0: i32) -> (i32, i32) {
    %c0_i32 = arith.constant 0 : i32
    %c0_i32_0 = arith.constant 0 : i32
    return %arg0, %c0_i32 : i32, i32
  }
  func.func @transform_2(%arg0: i32) -> (i32, i32) {
    %c0_i32 = arith.constant 0 : i32
    %c0_i32_0 = arith.constant 0 : i32
    %c0_i32_1 = arith.constant 0 : i32
    return %c0_i32, %c0_i32_0 : i32, i32
  }
  func.func @transform_3(%arg0: i32) -> (i32, i32) {
    %c0_i32 = arith.constant 0 : i32
    %c0_i32_0 = arith.constant 0 : i32
    %c0_i32_1 = arith.constant 0 : i32
    return %c0_i32, %c0_i32_0 : i32, i32
  }
  func.func @transform_4(%arg0: i32) -> (i32, i32) {
    %c0_i32 = arith.constant 0 : i32
    %c0_i32_0 = arith.constant 0 : i32
    %c0_i32_1 = arith.constant 0 : i32
    return %c0_i32, %c0_i32_0 : i32, i32
  }
  func.func @transform_5(%arg0: i32) -> (i32, i32) {
    %c0_i32 = arith.constant 0 : i32
    %c0_i32_0 = arith.constant 0 : i32
    %c0_i32_1 = arith.constant 0 : i32
    return %c0_i32, %c0_i32_0 : i32, i32
  }
  func.func @transform_6(%arg0: i32) -> (i32, i32) {
    %c0_i32 = arith.constant 0 : i32
    %c0_i32_0 = arith.constant 0 : i32
    %c0_i32_1 = arith.constant 0 : i32
    return %c0_i32, %c0_i32_0 : i32, i32
  }
  func.func @transform_7(%arg0: i32) -> (i32, i32) {
    %c0_i32 = arith.constant 0 : i32
    %c0_i32_0 = arith.constant 0 : i32
    %c0_i32_1 = arith.constant 0 : i32
    return %c0_i32, %c0_i32_0 : i32, i32
  }
  func.func @transform_8(%arg0: i32) -> (i32, i32) {
    %c0_i32 = arith.constant 0 : i32
    %c0_i32_0 = arith.constant 0 : i32
    %c0_i32_1 = arith.constant 0 : i32
    return %c0_i32, %c0_i32_0 : i32, i32
  }
  func.func @transform_9(%arg0: i32) -> (i32, i32) {
    %c0_i32 = arith.constant 0 : i32
    %c0_i32_0 = arith.constant 0 : i32
    %c0_i32_1 = arith.constant 0 : i32
    return %c0_i32, %c0_i32_0 : i32, i32
  }
  func.func @transform_10(%arg0: i32) -> (i32, i32) {
    %c0_i32 = arith.constant 0 : i32
    %c0_i32_0 = arith.constant 0 : i32
    return %arg0, %c0_i32 : i32, i32
  }
  func.func @transform_11(%arg0: i32) -> (i32, i32) {
    %c0_i32 = arith.constant 0 : i32
    %c0_i32_0 = arith.constant 0 : i32
    return %arg0, %c0_i32 : i32, i32
  }
}

</mosaic_0001>

<bundles_post_ra>
// kernel: tpu_custom_call.1
= control target key start
LH: loop header
LB: loop body
LE: loop exit
PB: predicated region body
PF: predicated region fallthrough
CT: control target
= control target key end

     0   :  { %17 = vsyncpa [#allocation3], 0  ;;  %s1098_s0 = inlined_call_operand.hbm [shape: f32[8,6], index: 0, kind: input, shape index: {}]   ;;  %s1099_s1 = inlined_call_operand.hbm [shape: f32[8,64], index: 1, kind: input, shape index: {}]   ;;  %s1100_s2 = inlined_call_operand.hbm [shape: f32[6,64], index: 2, kind: input, shape index: {}]   ;;  %s1101_s3 = inlined_call_operand.vmem [shape: f32[1,64], index: 3, kind: input, shape index: {}]   ;;  %s1102_s4 = inlined_call_operand.hbm [shape: f32[64,128], index: 4, kind: input, shape index: {}]   ;;  %s1103_s5 = inlined_call_operand.vmem [shape: f32[1,128], index: 5, kind: input, shape index: {}]   ;;  %s1104_s6 = inlined_call_operand.hbm [shape: f32[64,64], index: 6, kind: input, shape index: {}]   ;;  %s1105_s7 = inlined_call_operand.vmem [shape: f32[1,64], index: 7, kind: input, shape index: {}]   ;;  %s1106_s8 = inlined_call_operand.hbm [shape: f32[64,128], index: 8, kind: input, shape index: {}]   ;;  %s1107_s9 = inlined_call_operand.vmem [shape: f32[1,128], index: 9, kind: input, shape index: {}]   ;;  %s1108_s10 = inlined_call_operand.hbm [shape: f32[8,128], index: 10, kind: output, shape index: {0}]   ;;  %s1109_s11 = inlined_call_operand.hbm [shape: f32[8,128], index: 11, kind: output, shape index: {1}]  }
   0x1   :  { %18 = vsyncpa [#allocation6], 0 }
   0x2   :  { %19 = vsyncpa [#allocation9], 0 }
   0x3   :  { %20 = vsyncpa [#allocation12], 0 }
   0x4   :  { %21 = vsyncpa [#allocation4], 0 }
   0x5   :  { %22 = vsyncpa [#allocation15], 0  ;;  %s874_s17 = smov [#allocation5]   ;;  %s875_s19 = smov [#allocation8]  }
   0x6   :  { %s39_s18 = sshll.u32 %s874_s17, 4  ;;  %s60_s20 = sshll.u32 %s875_s19, 4  ;;  %s40_s18 = int_to_ptr.vmem [resolvable:$true] %s39_s18  ;;  %s948_s20 = int_to_ptr.vmem [resolvable:$true] %s60_s20 }
   0x7   :  { %s686_s23 = scalar_lea.hbm %s1099_s1, 128 }
   0x8   :  { %p687_p0 = scmp.ne.s32.totalorder %s1099_s1, %s686_s23  ;;  %p690_p1 = scmp.lt.u32.totalorder %s686_s23, %s1099_s1 }
   0xa   :  { %p692_p2 = pnand %p690_p1, %p687_p0 }
   0xc   :  { %695 = shalt.err (!%p692_p2)
}
   0xd   :  { %s696_s28 = scalar_lea.vmem %s40_s18, 128  ;;  %p701_p4 = scmp.lt.s32.totalorder %s40_s18, %s40_s18 }
   0xe   :  { %p697_p3 = scmp.ne.s32.totalorder %s40_s18, %s696_s28  ;;  %p702_p5 = scmp.lt.s32.totalorder %s696_s28, %s696_s28 }
  0x10   :  { %p703_p6 = por %p702_p5, %p701_p4 }
  0x12   :  { %p704_p7 = pnand %p703_p6, %p697_p3 }
  0x14   :  { %707 = shalt.err (!%p704_p7)
}
  0x15   :  { %42 = dma.hbm_to_vmem [thread:$0]  %s1099_s1, 128, %s40_s18, [#allocation6]  }
  0x16   :  { %s708_s14 = scalar_lea.hbm %s1102_s4, 1024 }
  0x17   :  { %p709_p8 = scmp.ne.s32.totalorder %s1102_s4, %s708_s14  ;;  %p712_p9 = scmp.lt.u32.totalorder %s708_s14, %s1102_s4 }
  0x19   :  { %p714_p10 = pnand %p712_p9, %p709_p8 }
  0x1b   :  { %717 = shalt.err (!%p714_p10)
}
  0x1c   :  { %s718_s21 = scalar_lea.vmem %s948_s20, 1024  ;;  %p723_p12 = scmp.lt.s32.totalorder %s948_s20, %s948_s20 }
  0x1d   :  { %p719_p11 = scmp.ne.s32.totalorder %s948_s20, %s718_s21  ;;  %p724_p13 = scmp.lt.s32.totalorder %s718_s21, %s718_s21 }
  0x1f   :  { %p725_p0 = por %p724_p13, %p723_p12 }
  0x21   :  { %p726_p1 = pnand %p725_p0, %p719_p11 }
  0x23   :  { %729 = shalt.err (!%p726_p1)
}
  0x24   :  { %s876_s1 = smov 128   ;;  %s877_s18 = smov 8  }
  0x25   :  { %66 = dma.hbm_to_vmem [thread:$0]  %s1102_s4, 1024, %s948_s20, [#allocation9], %s876_s1, %s876_s1, %s877_s18  }
  0x26   :  { %s878_s24 = smov [#allocation2]   ;;  %s879_s26 = smov [#allocation7]  }
  0x27   :  { %s29_s25 = sshll.u32 %s878_s24, 4  ;;  %s49_s27 = sshll.u32 %s879_s26, 4  ;;  %s30_s25 = int_to_ptr.vmem [resolvable:$true] %s29_s25  ;;  %s50_s27 = int_to_ptr.vmem [resolvable:$true] %s49_s27 }
  0x28   :  { %s730_s30 = scalar_lea.hbm %s1098_s0, 128 }
  0x29   :  { %p731_p2 = scmp.ne.s32.totalorder %s1098_s0, %s730_s30  ;;  %p734_p3 = scmp.lt.u32.totalorder %s730_s30, %s1098_s0 }
  0x2b   :  { %p736_p4 = pnand %p734_p3, %p731_p2 }
  0x2d   :  { %739 = shalt.err (!%p736_p4)
}
  0x2e   :  { %s740_s4 = scalar_lea.vmem %s30_s25, 128  ;;  %p745_p6 = scmp.lt.s32.totalorder %s30_s25, %s30_s25 }
  0x2f   :  { %p741_p5 = scmp.ne.s32.totalorder %s30_s25, %s740_s4  ;;  %p746_p7 = scmp.lt.s32.totalorder %s740_s4, %s740_s4 }
  0x31   :  { %p747_p8 = por %p746_p7, %p745_p6 }
  0x33   :  { %p748_p9 = pnand %p747_p8, %p741_p5 }
  0x35   :  { %751 = shalt.err (!%p748_p9)
}
  0x36   :  { %32 = dma.hbm_to_vmem [thread:$0]  %s1098_s0, 128, %s30_s25, [#allocation3]  }
  0x37   :  { %s752_s21 = scalar_lea.hbm %s1100_s2, 128 }
  0x38   :  { %p753_p10 = scmp.ne.s32.totalorder %s1100_s2, %s752_s21  ;;  %p756_p11 = scmp.lt.u32.totalorder %s752_s21, %s1100_s2 }
  0x3a   :  { %p758_p12 = pnand %p756_p11, %p753_p10 }
  0x3c   :  { %761 = shalt.err (!%p758_p12)
}
  0x3d   :  { %s762_s28 = scalar_lea.vmem %s50_s27, 128  ;;  %p767_p0 = scmp.lt.s32.totalorder %s50_s27, %s50_s27 }
  0x3e   :  { %p763_p13 = scmp.ne.s32.totalorder %s50_s27, %s762_s28  ;;  %p768_p1 = scmp.lt.s32.totalorder %s762_s28, %s762_s28 }
  0x40   :  { %p769_p2 = por %p768_p1, %p767_p0 }
  0x42   :  { %p770_p3 = pnand %p769_p2, %p763_p13 }
  0x44   :  { %773 = shalt.err (!%p770_p3)
}
  0x45   :  { %52 = dma.hbm_to_vmem [thread:$0]  %s1100_s2, 128, %s50_s27, [#allocation6]  }
  0x46   :  { %s880_s29 = smov [#allocation10]   ;;  %s881_s12 = smov [#allocation11]  }
  0x47   :  { %s74_s30 = sshll.u32 %s880_s29, 4  ;;  %s88_s13 = sshll.u32 %s881_s12, 4  ;;  %s75_s30 = int_to_ptr.vmem [resolvable:$true] %s74_s30  ;;  %s1006_s13 = int_to_ptr.vmem [resolvable:$true] %s88_s13 }
  0x48   :  { %s774_s4 = scalar_lea.hbm %s1104_s6, 1024 }
  0x49   :  { %p775_p4 = scmp.ne.s32.totalorder %s1104_s6, %s774_s4  ;;  %p778_p5 = scmp.lt.u32.totalorder %s774_s4, %s1104_s6 }
  0x4b   :  { %p780_p6 = pnand %p778_p5, %p775_p4 }
  0x4d   :  { %783 = shalt.err (!%p780_p6)
}
  0x4e   :  { %s784_s2 = scalar_lea.vmem %s75_s30, 1024  ;;  %p789_p8 = scmp.lt.s32.totalorder %s75_s30, %s75_s30 }
  0x4f   :  { %p785_p7 = scmp.ne.s32.totalorder %s75_s30, %s784_s2  ;;  %p790_p9 = scmp.lt.s32.totalorder %s784_s2, %s784_s2 }
  0x51   :  { %p791_p10 = por %p790_p9, %p789_p8 }
  0x53   :  { %p792_p11 = pnand %p791_p10, %p785_p7 }
  0x55   :  { %795 = shalt.err (!%p792_p11)
}
  0x56   :  { %80 = dma.hbm_to_vmem [thread:$0]  %s1104_s6, 1024, %s75_s30, [#allocation9], %s876_s1, %s876_s1, %s877_s18  }
  0x57   :  { %s796_s24 = scalar_lea.hbm %s1106_s8, 1024 }
  0x58   :  { %p797_p12 = scmp.ne.s32.totalorder %s1106_s8, %s796_s24  ;;  %p800_p13 = scmp.lt.u32.totalorder %s796_s24, %s1106_s8 }
  0x5a   :  { %p802_p0 = pnand %p800_p13, %p797_p12 }
  0x5c   :  { %805 = shalt.err (!%p802_p0)
}
  0x5d   :  { %s806_s29 = scalar_lea.vmem %s1006_s13, 1024  ;;  %p811_p2 = scmp.lt.s32.totalorder %s1006_s13, %s1006_s13 }
  0x5e   :  { %p807_p1 = scmp.ne.s32.totalorder %s1006_s13, %s806_s29  ;;  %p812_p3 = scmp.lt.s32.totalorder %s806_s29, %s806_s29 }
  0x60   :  { %p813_p4 = por %p812_p3, %p811_p2 }
  0x62   :  { %p814_p5 = pnand %p813_p4, %p807_p1 }
  0x64   :  { %817 = shalt.err (!%p814_p5)
}
  0x65   :  { %94 = dma.hbm_to_vmem [thread:$0]  %s1106_s8, 1024, %s1006_s13, [#allocation12], %s876_s1, %s876_s1, %s877_s18  }
  0x66   :  { %862 = dma.done.wait [#allocation3], 128  }
  0x67   :  { %863 = vsyncadd [#allocation3], 4294967168 }
  0x68   :  { %864 = dma.done.wait [#allocation6], 256  }
  0x69   :  { %865 = vsyncadd [#allocation6], 4294967040 }
  0x6a   :  { %866 = dma.done.wait [#allocation9], 2048  }
  0x6b   :  { %867 = vsyncadd [#allocation9], 4294965248 }
  0x6c   :  { %868 = dma.done.wait [#allocation12], 1024  }
  0x6d   :  { %869 = vsyncadd [#allocation12], 4294966272  ;;  %v882_v0 = vmov 0.0   ;;  %vm883_vm0 = vmmov 0   ;;  %v884_v1 = vmov 0.0|0.0   ;;  %vm128_vm1 = vcmask 1045504  }
  0x6e   :  { %564 = vmatprep.subr.mxu0 %v882_v0  ;;  %566 = vmatprep.mubr.msk.f32.mxu0 %vm883_vm0, %v882_v0  ;;  %vm124_vm2 = vcmask 48128   ;;  %v116_v2 = vld [vmem:[#allocation7] sm:$0x3f]  ;;  %v115_v3 = vld [vmem:[#allocation2] sm:$0xff]  ;;  %v203_v4 = vld [vmem:[#allocation8] sm:$0xff]  ;;  %vm218_vm3 = vcmask 523264   ;;  %v480_v61 = vlaneseq }
  0x6f   :  { %626 = vmatprep.subr.bf16.mxu1 %v884_v1  ;;  %585 = vmatprep.mubr.msk.f32.mxu1 %vm883_vm0, %v882_v0  ;;  %v204_v5 = vld [vmem:[#allocation8 + $0x8] sm:$0xff]  ;;  %v205_v7 = vld [vmem:[#allocation8 + $0x10] sm:$0xff]  ;;  %v206_v8 = vld [vmem:[#allocation8 + $0x18] sm:$0xff]  ;;  %s885_s12 = smov 64  }
  0x70   :  { %565 = vmatpush3.msk.msra.mxu0 %vm128_vm1, %v116_v2  ;;  %v627_v6 = vpack.c.bf16 %v204_v5, %v203_v4  ;;  %v630_v9 = vpack.c.bf16 %v206_v8, %v205_v7  ;;  %v207_v10 = vld [vmem:[#allocation8 + $0x20] sm:$0xff]  ;;  %v208_v11 = vld [vmem:[#allocation8 + $0x28] sm:$0xff]  ;;  %v209_v13 = vld [vmem:[#allocation8 + $0x30] sm:$0xff]  ;;  %v481_v62 = vand.u32 127, %v480_v61 }
  0x71   :  { %567 = vmatmul.mubr.msk.f32.vlgmr.msra.gmra.mrb[0].mxu0 %vm124_vm2, %v115_v3  ;;  %638 = vmatprep.subr.bf16.mxu0 %v884_v1  ;;  %v633_v12 = vpack.c.bf16 %v208_v11, %v207_v10  ;;  %v210_v14 = vld [vmem:[#allocation8 + $0x38] sm:$0xff]  ;;  %v526_v16 = vld [vmem:[%s1101_s3] ss:$0 sm:$0xff]  ;;  %v303_v21 = vld [vmem:[#allocation10] sm:$0xff] }
  0x72   :  { %604 = vmatprep.mubr.msk.f32.mxu0 %vm883_vm0, %v882_v0  ;;  %628 = vmatpush3.bf16.msra.mxu1 %v627_v6  ;;  %v636_v15 = vpack.c.bf16 %v210_v14, %v209_v13  ;;  %v304_v22 = vld [vmem:[#allocation10 + $0x8] sm:$0xff]  ;;  %v305_v23 = vld [vmem:[#allocation10 + $0x10] sm:$0xff]  ;;  %v306_v25 = vld [vmem:[#allocation10 + $0x18] sm:$0xff]  ;;  %vm482_vm4 = vcmp.lt.s32.totalorder %v481_v62, 6 }
  0x73   :  { %629 = vmatprep.subr.bf16.mxu1 %v884_v1  ;;  %v639_v24 = vpack.c.bf16 %v304_v22, %v303_v21  ;;  %v642_v26 = vpack.c.bf16 %v306_v25, %v305_v23  ;;  %v307_v27 = vld [vmem:[#allocation10 + $0x20] sm:$0xff]  ;;  %v308_v28 = vld [vmem:[#allocation10 + $0x28] sm:$0xff]  ;;  %v309_v35 = vld [vmem:[#allocation10 + $0x30] sm:$0xff] }
  0x74   :  { %v645_v29 = vpack.c.bf16 %v308_v28, %v307_v27  ;;  %v529_v30 = vld [vmem:[%s1103_s5] ss:$0 sm:$0xff]  ;;  %v310_v36 = vld [vmem:[#allocation10 + $0x38] sm:$0xff]  ;;  %v392_v39 = vld [vmem:[#allocation11] sm:$0xff] }
  0x75   :  { %640 = vmatpush3.bf16.msra.mxu0 %v639_v24  ;;  %v648_v37 = vpack.c.bf16 %v310_v36, %v309_v35  ;;  %v393_v40 = vld [vmem:[#allocation11 + $0x8] sm:$0xff]  ;;  %v293_v43 = vld [vmem:[#allocation5] sm:$0xff]  ;;  %v395_v48 = vld [vmem:[#allocation11 + $0x18] sm:$0xff] }
  0x76   :  { %631 = vmatpush3.bf16.msra.mxu1 %v630_v9  ;;  %641 = vmatprep.subr.bf16.mxu0 %v884_v1  ;;  %v651_v41 = vpack.c.bf16 %v393_v40, %v392_v39  ;;  %v394_v47 = vld [vmem:[#allocation11 + $0x10] sm:$0xff]  ;;  %v396_v50 = vld [vmem:[#allocation11 + $0x20] sm:$0xff]  ;;  %v397_v51 = vld [vmem:[#allocation11 + $0x28] sm:$0xff] }
  0x77   :  { %632 = vmatprep.subr.bf16.mxu1 %v884_v1  ;;  %v654_v49 = vpack.c.bf16 %v395_v48, %v394_v47  ;;  %v657_v52 = vpack.c.bf16 %v397_v51, %v396_v50  ;;  %v398_v53 = vld [vmem:[#allocation11 + $0x30] sm:$0xff]  ;;  %v399_v54 = vld [vmem:[#allocation11 + $0x38] sm:$0xff]  ;;  %v531_v56 = vld [vmem:[%s1105_s7] ss:$0 sm:$0xff]  ;;  %s886_s7 = smov [#allocation13]  }
  0x78   :  { %v660_v55 = vpack.c.bf16 %v399_v54, %v398_v53  ;;  %v533_v63 = vld [vmem:[%s1107_s9] ss:$0 sm:$0xff]  ;;  %s500_s4 = sshll.u32 %s886_s7, 4  ;;  %s501_s4 = int_to_ptr.vmem [resolvable:$true] %s500_s4 }
  0x79   :  { %643 = vmatpush3.bf16.msra.mxu0 %v642_v26  ;;  %s818_s20 = scalar_lea.vmem %s501_s4, 128  ;;  %p823_p7 = scmp.lt.s32.totalorder %s501_s4, %s501_s4 }
  0x7a   :  { %634 = vmatpush3.bf16.msra.mxu1 %v633_v12  ;;  %644 = vmatprep.subr.bf16.mxu0 %v884_v1  ;;  %p819_p6 = scmp.ne.s32.totalorder %s501_s4, %s818_s20  ;;  %p824_p8 = scmp.lt.s32.totalorder %s818_s20, %s818_s20 }
  0x7b   :  { %635 = vmatprep.subr.bf16.mxu1 %v884_v1 }
  0x7c   :  { %p825_p9 = por %p824_p8, %p823_p7 }
  0x7d   :  { %646 = vmatpush3.bf16.msra.mxu0 %v645_v29 }
  0x7e   :  { %637 = vmatpush3.bf16.msra.mxu1 %v636_v15  ;;  %647 = vmatprep.subr.bf16.mxu0 %v884_v1  ;;  %p826_p10 = pnand %p825_p9, %p819_p6 }
  0x7f   :  { %650 = vmatprep.subr.bf16.mxu1 %v884_v1 }
  0x81   :  { %649 = vmatpush3.bf16.msra.mxu0 %v648_v37 }
 0x144   :  { %v198_v17 = vpop.f32.mrb[0].mxu0 }
 0x145   :  { %v199_v18 = vadd.f32 %v526_v16, %v198_v17  ;;  %v568_v19 = vpop.f32.mrb[1].mxu0 }
 0x147   :  { %676 = vtanh.f32 %v199_v18 }
 0x151   :  { %v677_v20 = vpop.eup %676 }
 0x152   :  { %586 = vmatmul.mubr.msk.f32.vlgmr.msra.gmra.mrb[0].mxu1 %vm218_vm3, %v677_v20 }
 0x153   :  { %623 = vmatprep.mubr.msk.f32.mxu1 %vm883_vm0, %v882_v0  ;;  %652 = vmatpush3.bf16.msra.mxu1 %v651_v41 }
 0x154   :  { %653 = vmatprep.subr.bf16.mxu1 %v884_v1 }
 0x157   :  { %655 = vmatpush3.bf16.msra.mxu1 %v654_v49 }
 0x158   :  { %656 = vmatprep.subr.bf16.mxu1 %v884_v1 }
 0x15b   :  { %658 = vmatpush3.bf16.msra.mxu1 %v657_v52 }
 0x15c   :  { %659 = vmatprep.subr.bf16.mxu1 %v884_v1 }
 0x15f   :  { %661 = vmatpush3.bf16.msra.mxu1 %v660_v55 }
 0x225   :  { %v288_v31 = vpop.f32.mrb[0].mxu1 }
 0x226   :  { %v289_v32 = vadd.f32 %v529_v30, %v288_v31  ;;  %v587_v33 = vpop.f32.mrb[1].mxu1 }
 0x228   :  { %v294_v34 = vmul.f32 0.5, %v289_v32  ;;  %292 = vst [vmem:[#allocation13] sm:$0xff] %v289_v32 }
 0x22a   :  { %v295_v38 = vmul.f32 1.442695, %v294_v34 }
 0x22c   :  { %678 = vpow2.f32 %v295_v38 }
 0x236   :  { %v679_v42 = vpop.eup %678 }
 0x237   :  { %298 = vrot.lane.b32.xlu0 %v679_v42, %s885_s12 }
 0x2a9   :  { %v299_v44 = vpop.permute.xlu0 %298 }
 0x2aa   :  { %v301_v45 = vmul.f32 %v299_v44, %v293_v43 }
 0x2ac   :  { %v302_v46 = vadd.f32 %v301_v45, %v289_v32 }
 0x2ae   :  { %605 = vmatmul.mubr.msk.f32.vlgmr.msra.gmra.mrb[2].mxu0 %vm218_vm3, %v302_v46 }
 0x381   :  { %v387_v57 = vpop.f32.mrb[2].mxu0 }
 0x382   :  { %v388_v58 = vadd.f32 %v531_v56, %v387_v57  ;;  %v606_v59 = vpop.f32.mrb[3].mxu0 }
 0x384   :  { %680 = vtanh.f32 %v388_v58 }
 0x38e   :  { %v681_v60 = vpop.eup %680 }
 0x38f   :  { %624 = vmatmul.mubr.msk.f32.vlgmr.msra.gmra.mrb[2].mxu1 %vm218_vm3, %v681_v60 }
 0x462   :  { %v476_v0 = vpop.f32.mrb[2].mxu1 }
 0x463   :  { %v477_v1 = vadd.f32 %v533_v63, %v476_v0  ;;  %v625_v2 = vpop.f32.mrb[3].mxu1 }
 0x465   :  { %v483_v3 = vsel %vm482_vm4, %v477_v1, -inf }
 0x466   :  { %484 = vmax.xlane.f32.xlu0 %v483_v3 }
 0x4f3   :  { %v485_v4 = vpop.xlane.xlu0 %484 }
 0x4f4   :  { %v486_v5 = vsub.f32 %v483_v3, %v485_v4 }
 0x4f6   :  { %v487_v6 = vmul.f32 1.442695, %v486_v5 }
 0x4f8   :  { %682 = vpow2.f32 %v487_v6 }
 0x502   :  { %v683_v7 = vpop.eup %682 }
 0x503   :  { %489 = vadd.xlane.f32.xlu1 %v683_v7 }
 0x504   :  { %829 = shalt.err (!%p826_p10)
}
 0x505   :  { %s830_s17 = scalar_lea.hbm %s1108_s10, 128 }
 0x506   :  { %p831_p11 = scmp.ne.s32.totalorder %s1108_s10, %s830_s17  ;;  %p834_p12 = scmp.lt.u32.totalorder %s830_s17, %s1108_s10 }
 0x508   :  { %p836_p13 = pnand %p834_p12, %p831_p11 }
 0x50a   :  { %839 = shalt.err (!%p836_p13)
}
 0x50b   :  { %503 = dma.vmem_to_hbm [thread:$0]  %s501_s4, 128, %s1108_s10, [#allocation4]  }
 0x50c   :  { %s887_s24 = smov [#allocation14]  }
 0x50d   :  { %s510_s26 = sshll.u32 %s887_s24, 4  ;;  %s511_s26 = int_to_ptr.vmem [resolvable:$true] %s510_s26 }
 0x50e   :  { %s840_s28 = scalar_lea.vmem %s511_s26, 128  ;;  %p845_p1 = scmp.lt.s32.totalorder %s511_s26, %s511_s26 }
 0x50f   :  { %p841_p0 = scmp.ne.s32.totalorder %s511_s26, %s840_s28  ;;  %p846_p2 = scmp.lt.s32.totalorder %s840_s28, %s840_s28 }
 0x511   :  { %p847_p3 = por %p846_p2, %p845_p1 }
 0x513   :  { %p848_p4 = pnand %p847_p3, %p841_p0 }
 0x590   :  { %v490_v8 = vpop.xlane.xlu1 %489 }
 0x591   :  { %684 = vrcp.f32 %v490_v8 }
 0x59b   :  { %v685_v9 = vpop.eup %684 }
 0x59c   :  { %v492_v10 = vmul.f32 %v685_v9, %v683_v7 }
 0x59e   :  { %493 = vst [vmem:[#allocation14] sm:$0xff] %v492_v10 }
 0x59f   :  { %851 = shalt.err (!%p848_p4)
}
 0x5a0   :  { %s852_s29 = scalar_lea.hbm %s1109_s11, 128 }
 0x5a1   :  { %p853_p5 = scmp.ne.s32.totalorder %s1109_s11, %s852_s29  ;;  %p856_p6 = scmp.lt.u32.totalorder %s852_s29, %s1109_s11 }
 0x5a3   :  { %p858_p7 = pnand %p856_p6, %p853_p5 }
 0x5a5   :  { %861 = shalt.err (!%p858_p7)
}
 0x5a6   :  { %513 = dma.vmem_to_hbm [thread:$0]  %s511_s26, 128, %s1109_s11, [#allocation15]  }
 0x5a7   :  { %870 = dma.done.wait [#allocation4], 128  }
 0x5a8   :  { %871 = vsyncadd [#allocation4], 4294967168 }
 0x5a9   :  { %872 = dma.done.wait [#allocation15], 128  }
 0x5aa   :  { %873 = vsyncadd [#allocation15], 4294967168 }
 0x5ab   :  { %520 = vsyncpa [#allocation3], 1 }
 0x5ac   :  { %521 = vsyncpa [#allocation6], 1 }
 0x5ad   :  { %522 = vsyncpa [#allocation9], 1 }
 0x5ae   :  { %523 = vsyncpa [#allocation12], 1 }
 0x5af   :  { %524 = vsyncpa [#allocation4], 1 }
 0x5b0   :  { %525 = vsyncpa [#allocation15], 1 }

</bundles_post_ra>
